<compile_context>
chip_gen: v6e
topology: v6e:2x2x1
jax: 0.10.0
libtpu: 0.0.40
codegen_flags: <defaults>
</compile_context>

<pallas_src>
import jax
import jax.numpy as jnp
from jax.experimental import pallas as pl
from jax.experimental.pallas import tpu as pltpu


def _round_up(a, b):
    return ((a + b - 1) // b) * b


def _net2_kernel(x_ref, w1t_ref, w4t_ref, const_ref, o_ref):
    x = x_ref[...]                 # (TM, IN)        f32 or bf16
    w1t = w1t_ref[...]             # (IN, F)         pre-transposed, 2x folded in
    w4t = w4t_ref[...]             # (F, NOUT_PAD)   pre-transposed, lane-padded
    consts = const_ref[...]        # (2, F) f32: row0 = alpha*(r2 - ||w1_j||^2),
                                   #             row1 = -alpha (broadcast)

    c = consts[0:1, :]             # (1, F)
    neg_alpha = consts[1:2, 0:1]   # (1, 1) scalar tile

    # ||x||^2 per row, in f32 regardless of the matmul dtype.
    xf = x.astype(jnp.float32)
    xx = jnp.sum(xf * xf, axis=1, keepdims=True)                      # (TM, 1)

    # fc1 already carries the 2x scale (folded into w1t in the wrapper).  MXU.
    fc1 = jnp.dot(x, w1t, preferred_element_type=jnp.float32)         # (TM, F)

    # knn layer epilogue: two broadcast adds + one (TM,1) mul (no (TM,F) muls).
    h = jnp.maximum(fc1 + c + xx * neg_alpha, 0.0)                    # (TM, F)

    # fc4 (no bias); narrow lane-padded output (NOUT_PAD=8) -> small writeback.
    o_ref[...] = jnp.dot(h.astype(w4t.dtype), w4t,
                         preferred_element_type=jnp.float32)          # (TM, NOUT_PAD)


def net2_forward(x, alpha, r2_vec, params, *, block_b=512, use_bf16=False,
                 vmem_budget_bytes=40 * 1024 * 1024):
    """x: (B, inputs) f32, alpha: scalar, r2_vec: (features,) f32."""
    w1, w4 = params["w1"], params["w4"]          # torch layout: (F, IN), (2, F)
    B, IN = x.shape
    F = w1.shape[0]
    NOUT = w4.shape[0]
    NOUT_PAD = _round_up(NOUT, 8)                # 2 -> 8 lanes (16x less than 128)

    cdt = jnp.bfloat16 if use_bf16 else jnp.float32
    in_itemsize = 2 if use_bf16 else 4

    x = x.astype(jnp.float32)
    w1 = w1.astype(jnp.float32)
    w4 = w4.astype(jnp.float32)
    alpha = jnp.asarray(alpha, jnp.float32)
    r2_vec = r2_vec.astype(jnp.float32)

    # Wrapper-side layout plumbing (constant-folded once when the caller jits):
    w1t2 = (2.0 * w1.T).astype(cdt)                                        # (IN, F)
    w4t = jnp.zeros((F, NOUT_PAD), cdt).at[:, :NOUT].set(w4.T.astype(cdt))  # (F, P)

    # Per-parameter constants with alpha folded in (kept in f32 for accuracy).
    c = alpha * (r2_vec - jnp.sum(w1 * w1, axis=1))                        # (F,)
    consts = jnp.stack([c, jnp.full((F,), -alpha, jnp.float32)], axis=0)   # (2, F)

    # Pad batch only to a sublane multiple of 8 (no full pad-to-TM copy).
    B8 = _round_up(B, 8)
    xk = x.astype(cdt)
    if B8 != B:
        xk = jnp.zeros((B8, IN), cdt).at[:B, :].set(xk)

    # Batch tile: as large as the budget allows, but keep >=2 parallel grid
    # steps for v7x megacore when the batch is big enough to split.
    TM = min(_round_up(block_b, 8), B8)
    if B8 >= 128 and pl.cdiv(B8, TM) < 2:
        TM = _round_up(pl.cdiv(B8, 2), 8)

    def vmem_need(tm):
        x_tiles = 2 * tm * IN * in_itemsize            # double-buffered x tile
        o_tiles = 2 * tm * NOUT_PAD * 4                # double-buffered out tile
        weights = (IN * F + F * NOUT_PAD) * in_itemsize  # single-buffered residents
        return x_tiles + o_tiles + weights + 2 * F * 4

    while vmem_need(TM) > vmem_budget_bytes and TM > 8:
        TM = max(8, _round_up(TM // 2, 8))

    # Explicit scoped-VMEM limit: defaults are 16 MiB (v5e) / 32 MiB (v6e/v7x);
    # keep the cap well under v7x's 64 MiB physical VMEM.
    vmem_limit = int(max(32 * 1024 * 1024, vmem_need(TM) + 8 * 1024 * 1024))

    grid = (pl.cdiv(B8, TM),)

    cost = pl.CostEstimate(
        flops=int(2 * B8 * IN * F + 2 * B8 * F * NOUT_PAD + 6 * B8 * F),
        transcendentals=0,
        bytes_accessed=int(B8 * IN * in_itemsize
                           + (IN * F + F * NOUT_PAD) * in_itemsize
                           + 2 * F * 4
                           + B8 * NOUT_PAD * 4),
    )

    out = pl.pallas_call(
        _net2_kernel,
        out_shape=jax.ShapeDtypeStruct((B8, NOUT_PAD), jnp.float32),
        grid=grid,
        in_specs=[
            # streaming batch tile (double-buffered by default)
            pl.BlockSpec((TM, IN), lambda i: (i, 0)),
            # resident operands: block index never changes -> single-buffer them
            pl.BlockSpec((IN, F), lambda i: (0, 0),
                         pipeline_mode=pl.Buffered(1)),
            pl.BlockSpec((F, NOUT_PAD), lambda i: (0, 0),
                         pipeline_mode=pl.Buffered(1)),
            pl.BlockSpec((2, F), lambda i: (0, 0),
                         pipeline_mode=pl.Buffered(1)),
        ],
        out_specs=pl.BlockSpec((TM, NOUT_PAD), lambda i: (i, 0)),
        compiler_params=pltpu.CompilerParams(
            dimension_semantics=("parallel",),   # shards batch across v7x's 2 TCs
            vmem_limit_bytes=vmem_limit,
        ),
        cost_estimate=cost,
    )(xk, w1t2, w4t, consts)

    return out[:B, :NOUT]


def init_params(key, inputs, features):
    k1, k2 = jax.random.split(key, 2)
    # deterministic synthetic init (kaiming-ish scaling); no checkpoint load
    w1 = jax.random.normal(k1, (features, inputs), jnp.float32) / jnp.sqrt(inputs)
    w4 = jax.random.normal(k2, (2, features), jnp.float32) / jnp.sqrt(features)
    return {"w1": w1, "w4": w4}


def reference_forward(x, alpha, r2_vec, params):
    """Pure-JAX reference mirroring the PyTorch Net2 (bias=False on fc1/fc4)."""
    w1, w4 = params["w1"], params["w4"]
    xx = jnp.sum(x * x, axis=1, keepdims=True)
    mm = jnp.sum(w1 * w1, axis=1, keepdims=True).T
    h = alpha * (r2_vec[None, :] - mm - xx) + 2.0 * (x @ w1.T)
    h = jax.nn.relu(h)
    return h @ w4.T


if __name__ == "__main__":
    B, INPUTS, FEATURES = 2, 16, 32

    key = jax.random.PRNGKey(0)
    kx, kp, kr = jax.random.split(key, 3)

    x = jax.random.normal(kx, (B, INPUTS), jnp.float32)
    params = init_params(kp, INPUTS, FEATURES)

    # learnable radius r (forward takes r2); chosen near E[||x||] so the relu
    # is non-degenerate (roughly half the units active).
    r = jnp.sqrt(float(INPUTS)) * (
        1.0 + 0.1 * jax.random.normal(kr, (FEATURES,), jnp.float32))
    r2 = r * r
    alpha = 0.5

    # jit the whole forward so the wrapper-side weight prep (transpose, pad,
    # norm reduce, alpha fold) is compiled/fused once with the kernel.
    fwd = jax.jit(net2_forward, static_argnames=("block_b", "use_bf16"))

    # f32 path: bit-for-bit the module's semantics (tight tolerance).
    y = jax.block_until_ready(fwd(x, alpha, r2, params))
    y_ref = reference_forward(x, alpha, r2, params)
    assert y.shape == (B, 2)
    assert jnp.allclose(y, y_ref, atol=1e-4, rtol=1e-4), (y, y_ref)

    # bf16-matmul path (MXU-native throughput); looser tolerance vs f32 ref.
    y_bf16 = jax.block_until_ready(fwd(x, alpha, r2, params, use_bf16=True))
    assert y_bf16.shape == (B, 2)
    assert jnp.allclose(y_bf16, y_ref, atol=2e-1, rtol=1e-1), (y_bf16, y_ref)

    print("KERNEL_OK")
</pallas_src>

<mosaic_0001>
module attributes {stable_mosaic.version = 11 : i64} {
  func.func @_net2_kernel(%arg0: i32, %arg1: memref<8x16xf32, #tpu.memory_space<vmem>>, %arg2: memref<16x32xf32, #tpu.memory_space<vmem>>, %arg3: memref<32x8xf32, #tpu.memory_space<vmem>>, %arg4: memref<2x32xf32, #tpu.memory_space<vmem>>, %arg5: memref<8x8xf32, #tpu.memory_space<vmem>>) attributes {dimension_semantics = [#tpu.dimension_semantics<parallel>], iteration_bounds = array<i64: 1>, scalar_prefetch = 0 : i64, scratch_operands = 0 : i64, tpu.core_type = #tpu.core_type<tc>, window_params = [{transform_indices = @transform_0, window_bounds = array<i64: 8, 16>}, {pipeline_mode = #tpu.pipeline_mode<synchronous>, transform_indices = @transform_1, window_bounds = array<i64: 16, 32>}, {pipeline_mode = #tpu.pipeline_mode<synchronous>, transform_indices = @transform_2, window_bounds = array<i64: 32, 8>}, {pipeline_mode = #tpu.pipeline_mode<synchronous>, transform_indices = @transform_3, window_bounds = array<i64: 2, 32>}, {transform_indices = @transform_4, window_bounds = array<i64: 8, 8>}]} {
    %c0 = arith.constant 0 : index
    %c0_0 = arith.constant 0 : index
    %0 = vector.load %arg1[%c0, %c0_0] : memref<8x16xf32, #tpu.memory_space<vmem>>, vector<8x16xf32>
    %c0_1 = arith.constant 0 : index
    %c0_2 = arith.constant 0 : index
    %1 = vector.load %arg2[%c0_1, %c0_2] : memref<16x32xf32, #tpu.memory_space<vmem>>, vector<16x32xf32>
    %c0_3 = arith.constant 0 : index
    %c0_4 = arith.constant 0 : index
    %2 = vector.load %arg3[%c0_3, %c0_4] : memref<32x8xf32, #tpu.memory_space<vmem>>, vector<32x8xf32>
    %c0_5 = arith.constant 0 : index
    %c0_6 = arith.constant 0 : index
    %3 = vector.load %arg4[%c0_5, %c0_6] : memref<2x32xf32, #tpu.memory_space<vmem>>, vector<2x32xf32>
    %4 = vector.extract_strided_slice %3 {offsets = [0, 0], sizes = [1, 32], strides = [1, 1]} : vector<2x32xf32> to vector<1x32xf32>
    %5 = vector.extract_strided_slice %3 {offsets = [1, 0], sizes = [1, 1], strides = [1, 1]} : vector<2x32xf32> to vector<1x1xf32>
    %6 = arith.mulf %0, %0 : vector<8x16xf32>
    %cst = arith.constant dense<0.000000e+00> : vector<8xf32>
    %7 = vector.multi_reduction <add>, %6, %cst [1] : vector<8x16xf32> to vector<8xf32>
    %8 = vector.shape_cast %7 : vector<8xf32> to vector<8x1xf32>
    %cst_7 = arith.constant dense<0.000000e+00> : vector<8x32xf32>
    %9 = tpu.matmul %0, %1, %cst_7 {dimension_numbers = #tpu.dot_dimension_numbers<[1], [0], [0], [1], [0, 0, 1, 1], [], []>} : vector<8x16xf32>, vector<16x32xf32>, vector<8x32xf32> -> vector<8x32xf32>
    %10 = vector.broadcast %4 : vector<1x32xf32> to vector<8x32xf32>
    %11 = arith.addf %9, %10 : vector<8x32xf32>
    %12 = vector.broadcast %5 : vector<1x1xf32> to vector<8x1xf32>
    %13 = arith.mulf %8, %12 : vector<8x1xf32>
    %14 = vector.broadcast %13 : vector<8x1xf32> to vector<8x32xf32>
    %15 = arith.addf %11, %14 : vector<8x32xf32>
    %cst_8 = arith.constant 0.000000e+00 : f32
    %16 = vector.broadcast %cst_8 : f32 to vector<8x32xf32>
    %17 = arith.maximumf %15, %16 : vector<8x32xf32>
    %cst_9 = arith.constant dense<0.000000e+00> : vector<8x8xf32>
    %18 = tpu.matmul %17, %2, %cst_9 {dimension_numbers = #tpu.dot_dimension_numbers<[1], [0], [0], [1], [0, 0, 1, 1], [], []>} : vector<8x32xf32>, vector<32x8xf32>, vector<8x8xf32> -> vector<8x8xf32>
    %c0_10 = arith.constant 0 : index
    %c0_11 = arith.constant 0 : index
    %19 = vector.load %arg5[%c0_10, %c0_11] : memref<8x8xf32, #tpu.memory_space<vmem>>, vector<8x8xf32>
    tpu.vector_store %arg5[%c0_10, %c0_11], %18 {strides = array<i32>} : memref<8x8xf32, #tpu.memory_space<vmem>>, vector<8x8xf32>,
    return
  }
  func.func @transform_0(%arg0: i32) -> (i32, i32) {
    %c0_i32 = arith.constant 0 : i32
    %c0_i32_0 = arith.constant 0 : i32
    return %arg0, %c0_i32 : i32, i32
  }
  func.func @transform_1(%arg0: i32) -> (i32, i32) {
    %c0_i32 = arith.constant 0 : i32
    %c0_i32_0 = arith.constant 0 : i32
    %c0_i32_1 = arith.constant 0 : i32
    return %c0_i32, %c0_i32_0 : i32, i32
  }
  func.func @transform_2(%arg0: i32) -> (i32, i32) {
    %c0_i32 = arith.constant 0 : i32
    %c0_i32_0 = arith.constant 0 : i32
    %c0_i32_1 = arith.constant 0 : i32
    return %c0_i32, %c0_i32_0 : i32, i32
  }
  func.func @transform_3(%arg0: i32) -> (i32, i32) {
    %c0_i32 = arith.constant 0 : i32
    %c0_i32_0 = arith.constant 0 : i32
    %c0_i32_1 = arith.constant 0 : i32
    return %c0_i32, %c0_i32_0 : i32, i32
  }
  func.func @transform_4(%arg0: i32) -> (i32, i32) {
    %c0_i32 = arith.constant 0 : i32
    %c0_i32_0 = arith.constant 0 : i32
    return %arg0, %c0_i32 : i32, i32
  }
}

</mosaic_0001>

<bundles_post_ra>
// kernel: net2_forward.1
= control target key start
LH: loop header
LB: loop body
LE: loop exit
PB: predicated region body
PF: predicated region fallthrough
CT: control target
= control target key end

     0   :  { %vm26_vm0 = vcmask 130048   ;;  %v231_v1 = vmov 0.0   ;;  %vm232_vm1 = vmmov 0   ;;  %v30_v6 = vlaneseq  ;;  %s286_s0 = inlined_call_operand.vmem [shape: f32[8,16], index: 0, kind: input, shape index: {}]   ;;  %s287_s1 = inlined_call_operand.vmem [shape: f32[16,32], index: 1, kind: input, shape index: {}]   ;;  %s288_s3 = inlined_call_operand.vmem [shape: f32[2,32], index: 3, kind: input, shape index: {}]   ;;  %s289_s2 = inlined_call_operand.vmem [shape: f32[32,8], index: 2, kind: input, shape index: {}]   ;;  %s290_s4 = inlined_call_operand.vmem [shape: f32[8,8], index: 4, kind: output, shape index: {}]  }
   0x1   :  { %v17_v0 = vld [vmem:[%s286_s0] sm:$0xff]  ;;  %209 = vmatprep.subr.mxu0 %v231_v1  ;;  %v19_v2 = vld [vmem:[%s287_s1 + $0x8] sm:$0xff]  ;;  %213 = vmatprep.mubr.msk.f32.mxu0 %vm232_vm1, %v231_v1  ;;  %v233_v8 = vmov 0   ;;  %v23_v12 = vld [vmem:[%s289_s2 + $0x18] sm:$0xff]  ;;  %vm119_vm2 = vcmask 261120   ;;  %vm193_vm3 = vcmask 64512  }
   0x2   :  { %v18_v3 = vld [vmem:[%s287_s1] sm:$0xff]  ;;  %v25_v4 = vmul.f32 %v17_v0, %v17_v0  ;;  %210 = vmatpush3.msra.mxu0 %v19_v2  ;;  %216 = vmatprep.subr.mxu1 %v231_v1  ;;  %v31_v7 = vshrl.u32 %v30_v6, 7  ;;  %v22_v13 = vld [vmem:[%s289_s2 + $0x10] sm:$0xff]  ;;  %v21_v16 = vld [vmem:[%s289_s2 + $0x8] sm:$0xff] }
   0x3   :  { %211 = vmatprep.subr.mxu0 %v231_v1  ;;  %224 = vmatprep.mubr.msk.f32.mxu1 %vm232_vm1, %v231_v1  ;;  %v24_v10 = vld [vmem:[%s288_s3] sm:$0x3] }
   0x4   :  { %v27_v5 = vsel %vm26_vm0, %v25_v4, 0.0  ;;  %212 = vmatpush3.msra.mxu0 %v18_v3  ;;  %230 = vset.pattern.permute.xlu0 %v233_v8  ;;  %v32_v9 = vsub.s32 0, %v31_v7  ;;  %v109_v14 = vsub.s32 1, %v31_v7  ;;  %v20_v19 = vld [vmem:[%s289_s2] sm:$0xff] }
   0x5   :  { %28 = vadd.xlane.f32.xlu0 %v27_v5  ;;  %214 = vmatmul.mubr.msk.f32.vlgmr.msra.gmra.mxu0 %vm26_vm0, %v17_v0 }
   0x6   :  { %v33_v11 = vrot.slane %v24_v10, %v32_v9  ;;  %217 = vmatpush3.msra.mxu1 %v23_v12  ;;  %v110_v15 = vrot.slane %v24_v10, %v109_v14 }
   0x7   :  { %218 = vmatprep.subr.mxu1 %v231_v1 }
   0x8   :  { %219 = vmatpush3.msra.mxu1 %v22_v13 }
   0x9   :  { %220 = vmatprep.subr.mxu1 %v231_v1 }
   0xa   :  { %221 = vmatpush3.msra.mxu1 %v21_v16 }
   0xb   :  { %222 = vmatprep.subr.mxu1 %v231_v1 }
   0xc   :  { %223 = vmatpush3.msra.mxu1 %v20_v19 }
  0x8e   :  { %v29_v17 = vpop.xlane.xlu0 %28 }
  0x8f   :  { %v111_v18 = vmul.f32 %v110_v15, %v29_v17 }
  0x91   :  { %114 = vperm.xlu0 %230, %v111_v18  }
  0xc5   :  { %v103_v20 = vpop.f32.mrf.mxu0 }
  0xc6   :  { %v104_v21 = vadd.f32 %v103_v20, %v33_v11 }
  0xc7   :  { %v215_v22 = vpop.f32.mrf.mxu0 }
 0x10c   :  { %v115_v23 = vpop.permute.xlu0 %114 }
 0x10d   :  { %v117_v24 = vadd.f32 %v115_v23, %v104_v21 }
 0x10f   :  { %v118_v25 = vmax.f32 %v117_v24, 0.0 }
 0x111   :  { %225 = vmatmul.mubr.msk.f32.vlgmr.msra.gmra.mxu1 %vm119_vm2, %v118_v25 }
 0x1d1   :  { %v189_v26 = vpop.f32.mrf.mxu1 }
 0x1d2   :  { %194 = vst.msk [vmem:[%s290_s4] sm:$0xff] %vm193_vm3, %v189_v26 }
 0x1d3   :  { %v226_v27 = vpop.f32.mrf.mxu1 }

</bundles_post_ra>
